<compile_context>
chip_gen: v7x
topology: tpu7x:2x2x1
jax: 0.10.0
libtpu: 0.0.40
codegen_flags: <defaults>
</compile_context>

<pallas_src>
import jax
import jax.numpy as jnp
import numpy as np
from jax.experimental import pallas as pl
from jax.experimental.pallas import tpu as pltpu


def _round_up(x, m):
    return ((x + m - 1) // m) * m


def _vmem_limit_bytes():
    """Generation-aware VMEM budget: ~half of physical VMEM (v5e/v6e -> 64 MiB,
    v7x -> 32 MiB), conservative fallback if the query is unavailable."""
    try:
        cap = getattr(pltpu.get_tpu_info(), "vmem_capacity_bytes", None)
        if cap:
            return int(cap) // 2
    except Exception:
        pass
    return 32 * 1024 * 1024


# -----------------------------------------------------------------------------
# Kernel A: MLP -> (heads_pad, P_pad) bias table, positions on the lane axis.
# -----------------------------------------------------------------------------
def _make_mlp_kernel(num_hidden_dim_layers: int, log_distance: bool, hidden_dtype):
    def kernel(*refs):
        pos_ref = refs[0]
        out_ref = refs[-1]

        x = pos_ref[...].astype(jnp.float32)                     # (1, tP)
        if log_distance:
            x = jnp.sign(x) * jnp.log(jnp.abs(x) + 1.0)

        # Linear(1, dim): h[d, p] = w1[d] * x[p] + b1[d]  (exact f32 broadcast FMA, VPU)
        w1 = refs[1][...]                                        # (dim_pad, 1) f32
        b1 = refs[2][...]                                        # (dim_pad, 1) f32
        # Activations stay in bf16 between layers (per review): one cast per layer,
        # matmul accuracy unchanged (inputs were already bf16).
        x = jnp.maximum(w1 * x + b1, 0.0).astype(hidden_dtype)   # (dim_pad, tP)

        r = 3
        for _ in range(num_hidden_dim_layers):                   # depth-1 x Linear(dim, dim)
            wt = refs[r][...]                                    # (dim_pad, dim_pad) bf16
            bt = refs[r + 1][...]                                # (dim_pad, 1)  f32
            r += 2
            h = jnp.dot(wt, x, preferred_element_type=jnp.float32) + bt
            x = jnp.maximum(h, 0.0).astype(hidden_dtype)

        wf = refs[r][...]                                        # (Hp, dim_pad) bf16
        bf = refs[r + 1][...]                                    # (Hp, 1) f32
        out_ref[...] = (jnp.dot(wf, x, preferred_element_type=jnp.float32)
                        + bf).astype(out_ref.dtype)
    return kernel


def dynamic_position_bias_table(pos, params, *, log_distance=False,
                                hidden_dtype=jnp.bfloat16):
    """Pallas MLP.  Returns table_T (Hp, P_pad) f32 with table_T[h, p] = MLP(pos[p])[h]
    for p < P and h < heads (padded rows/cols are harmless and never used)."""
    P = int(pos.shape[0])
    dim = int(params[0][0].shape[1])
    heads = int(params[-1][0].shape[1])
    depth = len(params) - 1

    P_pad = _round_up(P, 128)              # lane axis of the table
    dim_pad = _round_up(dim, 8)            # sublane axis of activations
    Hp = _round_up(heads, 8)               # sublane axis of the table

    pos_row = jnp.pad(jnp.reshape(pos.astype(jnp.float32), (1, P)),
                      ((0, 0), (0, P_pad - P)))

    # Weights transposed (zero padding is mathematically exact through ReLU + matmuls).
    flat = [pos_row]
    w1, b1 = params[0]
    flat.append(jnp.pad(w1.astype(jnp.float32).T, ((0, dim_pad - dim), (0, 0))))
    flat.append(jnp.pad(b1.astype(jnp.float32).reshape(-1, 1), ((0, dim_pad - dim), (0, 0))))
    for w, b in params[1:-1]:
        flat.append(jnp.pad(w.astype(jnp.float32).T,
                            ((0, dim_pad - dim), (0, dim_pad - dim))).astype(hidden_dtype))
        flat.append(jnp.pad(b.astype(jnp.float32).reshape(-1, 1), ((0, dim_pad - dim), (0, 0))))
    wf, bf = params[-1]
    flat.append(jnp.pad(wf.astype(jnp.float32).T,
                        ((0, Hp - heads), (0, dim_pad - dim))).astype(hidden_dtype))
    flat.append(jnp.pad(bf.astype(jnp.float32).reshape(-1, 1), ((0, Hp - heads), (0, 0))))

    # Tile over P (lane axis), weights resident.  Activation footprint is only
    # dim_pad * tP * 2 bytes, so tiles up to 2048 lanes are cheap (fewer grid steps).
    if P_pad <= 2048:
        tP = P_pad
    else:
        tP = max(c for c in (2048, 1024, 512, 256, 128) if P_pad % c == 0)
    grid = (P_pad // tP,)

    in_specs = [pl.BlockSpec((1, tP), lambda i: (0, i))]
    for a in flat[1:]:
        # Constant index_map -> fetched once and kept resident.  (pl.Buffered(1) could
        # halve the resident weight VMEM for very large dim; negligible at dim<=128.)
        in_specs.append(pl.BlockSpec(a.shape, lambda i: (0, 0)))

    return pl.pallas_call(
        _make_mlp_kernel(depth - 1, log_distance, hidden_dtype),
        out_shape=jax.ShapeDtypeStruct((Hp, P_pad), jnp.float32),
        grid=grid,
        in_specs=in_specs,
        out_specs=pl.BlockSpec((Hp, tP), lambda i: (0, i)),
        compiler_params=pltpu.CompilerParams(
            dimension_semantics=("parallel",),
            vmem_limit_bytes=_vmem_limit_bytes()),
    )(*flat)


# -----------------------------------------------------------------------------
# Kernel B: fused gather + rearrange via window slicing of the reversed table.
# -----------------------------------------------------------------------------
def _choose_block_rows(S, heads, out_itemsize, target_bytes=2 * 1024 * 1024, max_rows=64):
    """Pick tI (rows per grid step): tI | S, tI % 8 == 0 (or tI == S), output block
    (heads, tI, S) around 0.5-2 MiB, unroll bounded by max_rows."""
    if heads * S * S * out_itemsize <= target_bytes and S <= 128:
        return S                                   # single output block
    best = None
    t = 8
    while t <= min(S, max_rows):
        if S % t == 0 and heads * t * S * out_itemsize <= target_bytes:
            best = t
        t += 8
    return best if best is not None else S         # rare fallback (e.g. odd S)


_ROLL_MODE_CACHE = {}


def _dynamic_roll_mode():
    """Probe the direction convention of pltpu.roll with a *dynamic* shift.
    Returns +1 if it matches jnp.roll (out[k] = in[(k - s) % N]), -1 if it is the
    opposite rotation, None if dynamic lane rotate is unsupported."""
    if "mode" in _ROLL_MODE_CACHE:
        return _ROLL_MODE_CACHE["mode"]
    mode = None
    try:
        def probe(x_ref, o_ref):
            # grid=(2,): both steps write the same block; the last (shift = 1) wins.
            o_ref[...] = pltpu.roll(x_ref[...], pl.program_id(0), axis=1)

        x = jnp.tile(jnp.arange(128, dtype=jnp.float32)[None, :], (8, 1))
        y = pl.pallas_call(
            probe,
            out_shape=jax.ShapeDtypeStruct((8, 128), jnp.float32),
            grid=(2,),
            in_specs=[pl.BlockSpec((8, 128), lambda i: (0, 0))],
            out_specs=pl.BlockSpec((8, 128), lambda i: (0, 0)),
        )(x)
        y0 = float(jax.block_until_ready(y)[0, 0])
        if y0 == 127.0:
            mode = 1
        elif y0 == 1.0:
            mode = -1
    except Exception:
        mode = None
    _ROLL_MODE_CACHE["mode"] = mode
    return mode


def _make_expand_kernel(S, tI, P_pad, heads, roll_mode, num_blocks):
    """Out block (heads, tI, S): row i0+di is rev[:, (S-1-i0-di) : (S-1-i0-di)+S].
    One dynamic roll per block aligns the window; per-row slices/stores are static."""
    def kernel(tab_ref, out_ref):
        win = tab_ref[...]                                       # (Hp, P_pad) f32
        if num_blocks > 1:
            g = pl.program_id(0)
            base = (num_blocks - 1 - g) * tI                     # = S - tI*(g+1) >= 0
            if roll_mode == 1:    # jnp.roll convention: out[k] = in[(k - s) % N]
                shift = (P_pad - base) % P_pad
            else:                 # opposite convention: out[k] = in[(k + s) % N]
                shift = base
            win = pltpu.roll(win, shift, axis=1)                 # win[:, k] = rev[:, base+k]
        for di in range(tI):                                     # static unroll
            off = tI - 1 - di
            out_ref[:, di, :] = win[:heads, off:off + S].astype(out_ref.dtype)
    return kernel


def _expand_from_reversed_table_xla(table_rev, S, heads, out_dtype):
    """Cheap XLA skew-trick fallback (broadcast + reshape + static slice), used only if
    the dynamic lane rotate is unsupported on this backend."""
    P = 2 * S - 1
    rev = table_rev[:heads, :P]
    if S == 1:
        return rev.reshape(heads, 1, 1).astype(out_dtype)
    flat = jnp.broadcast_to(rev[:, None, :], (heads, S, P)).reshape(heads, S * P)
    sl = flat[:, S - 1: S - 1 + S * (2 * S - 2)]
    return sl.reshape(heads, S, 2 * S - 2)[:, :, :S].astype(out_dtype)


def dynamic_position_bias_forward(pos, params, *, batch, seq_len, log_distance=False,
                                  hidden_dtype=jnp.bfloat16, out_dtype=jnp.float32,
                                  block_rows=None):
    """Fused forward for the module's standard relative-position indexing
    indices[b, i, j] = i - j + (seq_len - 1).  Returns bias of shape (B, heads, S, S).
    Set out_dtype=jnp.bfloat16 to halve HBM writeback if downstream accepts it."""
    P = int(pos.shape[0])
    S = int(seq_len)
    B = int(batch)
    heads = int(params[-1][0].shape[1])
    assert P == 2 * S - 1, "fused path assumes pos covers relative distances -(S-1)..(S-1)"

    # Feeding pos reversed makes kernel A emit the reversed table directly:
    #   rev[h, k] = MLP(pos[P-1-k])[h]   =>   bias[h, i, j] = rev[h, (S-1-i) + j]
    # i.e. every output row is a contiguous window of rev (gather-by-slice).
    pos_rev = jnp.flip(jnp.asarray(pos), axis=0)
    table_rev = dynamic_position_bias_table(pos_rev, params, log_distance=log_distance,
                                            hidden_dtype=hidden_dtype)      # (Hp, P_pad) f32
    Hp, P_pad = table_rev.shape

    out_itemsize = jnp.dtype(out_dtype).itemsize
    tI = int(block_rows) if block_rows is not None else _choose_block_rows(S, heads, out_itemsize)
    assert S % tI == 0 and (tI == S or tI % 8 == 0), "block_rows must divide S and be a multiple of 8"
    G = S // tI

    roll_mode = 0
    if G > 1:
        roll_mode = _dynamic_roll_mode()
        if roll_mode is None:
            # TODO(synk): dynamic lane rotate unavailable on this backend -> XLA fallback.
            bias = _expand_from_reversed_table_xla(table_rev, S, heads, out_dtype)
            return jnp.broadcast_to(bias[None], (B, heads, S, S))

    bias = pl.pallas_call(
        _make_expand_kernel(S, tI, P_pad, heads, roll_mode, G),
        out_shape=jax.ShapeDtypeStruct((heads, S, S), out_dtype),
        grid=(G,),
        in_specs=[pl.BlockSpec((Hp, P_pad), lambda g: (0, 0))],   # reversed table resident
        out_specs=pl.BlockSpec((heads, tI, S), lambda g: (0, g, 0)),
        compiler_params=pltpu.CompilerParams(
            dimension_semantics=("parallel",),                   # megacore-splittable i-axis
            vmem_limit_bytes=_vmem_limit_bytes()),
    )(table_rev)

    # The bias is batch independent: broadcast over B in the wrapper (no B x recompute /
    # rewrite in the kernel; downstream adds fuse the broadcast).
    return jnp.broadcast_to(bias[None], (B, heads, S, S))


def dynamic_position_bias_forward_general(pos, indices, params, *, log_distance=False,
                                          hidden_dtype=jnp.bfloat16):
    """Fallback for arbitrary `indices`: Pallas MLP table + XLA gather from the
    transposed (lane-dense) table, already producing (B, H, I, J) order.
    # TODO(synk): a fully data-dependent gather would need an in-kernel DMA-gather path;
    # the standard relative-position case is covered by the fused kernel above."""
    P = int(pos.shape[0])
    heads = int(params[-1][0].shape[1])
    table_T = dynamic_position_bias_table(pos, params, log_distance=log_distance,
                                          hidden_dtype=hidden_dtype)[:heads, :P]
    bias = jnp.take(table_T, indices, axis=1)        # (H, B, I, J), J lane-dense
    return jnp.transpose(bias, (1, 0, 2, 3))         # (B, H, I, J)


# -----------------------------------------------------------------------------
# Pure-JAX reference (mirrors the PyTorch forward; hidden/final dots use the same
# bf16-in / f32-acc math as the kernel so the comparison is meaningful).
# -----------------------------------------------------------------------------
def _reference_forward(pos, indices, params, *, log_distance=False,
                       hidden_dtype=jnp.bfloat16):
    x = pos.astype(jnp.float32)                                   # (P, 1)
    if log_distance:
        x = jnp.sign(x) * jnp.log(jnp.abs(x) + 1.0)
    w1, b1 = params[0]
    x = jnp.maximum(x * w1 + b1, 0.0)                             # Linear(1, dim), exact f32
    for w, b in params[1:-1]:
        h = jnp.dot(x.astype(hidden_dtype), w.astype(hidden_dtype),
                    preferred_element_type=jnp.float32) + b
        x = jnp.maximum(h, 0.0)
    w, b = params[-1]
    x = jnp.dot(x.astype(hidden_dtype), w.astype(hidden_dtype),
                preferred_element_type=jnp.float32) + b
    bias = x[indices]                                             # (B, I, J, H)
    return jnp.transpose(bias, (0, 3, 1, 2))                      # (B, H, I, J)


# -----------------------------------------------------------------------------
# Deterministic parameter init (shapes from DynamicPositionBias.__init__).
# -----------------------------------------------------------------------------
def init_params(key, dim, heads, depth):
    params = []
    in_features = 1
    for _ in range(depth):                                        # hidden Linear + ReLU
        key, kw, kb = jax.random.split(key, 3)
        w = jax.random.normal(kw, (in_features, dim), jnp.float32) * 0.1
        b = jax.random.normal(kb, (1, dim), jnp.float32) * 0.1
        params.append((w, b))
        in_features = dim
    key, kw, kb = jax.random.split(key, 3)                        # final Linear(dim, heads)
    w = jax.random.normal(kw, (dim, heads), jnp.float32) * 0.1
    b = jax.random.normal(kb, (1, heads), jnp.float32) * 0.1
    params.append((w, b))
    return params


if __name__ == "__main__":
    dim, heads, depth = 32, 4, 2
    seq, batch = 16, 2
    log_distance = False                                          # module default

    key = jax.random.PRNGKey(0)
    params = init_params(key, dim, heads, depth)

    P = 2 * seq - 1
    pos = jnp.arange(-(seq - 1), seq, dtype=jnp.float32)[:, None]            # (P, 1)

    i_idx = jnp.arange(seq)[:, None]
    j_idx = jnp.arange(seq)[None, :]
    indices = jnp.broadcast_to((i_idx - j_idx + seq - 1)[None, :, :],
                               (batch, seq, seq)).astype(jnp.int32)          # (B, S, S)

    ref = _reference_forward(pos, indices, params, log_distance=log_distance)
    ref = jax.block_until_ready(ref)

    # (1) default tiling: single output block (no dynamic rotate needed).
    out = dynamic_position_bias_forward(pos, params, batch=batch, seq_len=seq,
                                        log_distance=log_distance)
    out = jax.block_until_ready(out)
    assert out.shape == (batch, heads, seq, seq), out.shape
    np.testing.assert_allclose(np.asarray(out), np.asarray(ref), rtol=2e-2, atol=2e-3)

    # (2) forced multi-block grid: exercises the dynamic-roll window gather.
    out2 = dynamic_position_bias_forward(pos, params, batch=batch, seq_len=seq,
                                         log_distance=log_distance, block_rows=8)
    out2 = jax.block_until_ready(out2)
    np.testing.assert_allclose(np.asarray(out2), np.asarray(ref), rtol=2e-2, atol=2e-3)

    # (3) general (arbitrary indices) path.
    out3 = dynamic_position_bias_forward_general(pos, indices, params,
                                                 log_distance=log_distance)
    out3 = jax.block_until_ready(out3)
    np.testing.assert_allclose(np.asarray(out3), np.asarray(ref), rtol=2e-2, atol=2e-3)

    print("KERNEL_OK")
</pallas_src>

<mosaic_0001>
module attributes {stable_mosaic.version = 11 : i64} {
  func.func @kernel(%arg0: i32, %arg1: memref<1x128xf32, #tpu.memory_space<vmem>>, %arg2: memref<32x1xf32, #tpu.memory_space<vmem>>, %arg3: memref<32x1xf32, #tpu.memory_space<vmem>>, %arg4: memref<32x32xbf16, #tpu.memory_space<vmem>>, %arg5: memref<32x1xf32, #tpu.memory_space<vmem>>, %arg6: memref<8x32xbf16, #tpu.memory_space<vmem>>, %arg7: memref<8x1xf32, #tpu.memory_space<vmem>>, %arg8: memref<8x128xf32, #tpu.memory_space<vmem>>) attributes {dimension_semantics = [#tpu.dimension_semantics<parallel>], iteration_bounds = array<i64: 1>, scalar_prefetch = 0 : i64, scratch_operands = 0 : i64, tpu.core_type = #tpu.core_type<tc>, window_params = [{transform_indices = @transform_0, window_bounds = array<i64: 1, 128>}, {pipeline_mode = #tpu.pipeline_mode<synchronous>, transform_indices = @transform_1, window_bounds = array<i64: 32, 1>}, {pipeline_mode = #tpu.pipeline_mode<synchronous>, transform_indices = @transform_2, window_bounds = array<i64: 32, 1>}, {pipeline_mode = #tpu.pipeline_mode<synchronous>, transform_indices = @transform_3, window_bounds = array<i64: 32, 32>}, {pipeline_mode = #tpu.pipeline_mode<synchronous>, transform_indices = @transform_4, window_bounds = array<i64: 32, 1>}, {pipeline_mode = #tpu.pipeline_mode<synchronous>, transform_indices = @transform_5, window_bounds = array<i64: 8, 32>}, {pipeline_mode = #tpu.pipeline_mode<synchronous>, transform_indices = @transform_6, window_bounds = array<i64: 8, 1>}, {transform_indices = @transform_7, window_bounds = array<i64: 8, 128>}]} {
    %c0 = arith.constant 0 : index
    %c0_0 = arith.constant 0 : index
    %0 = vector.load %arg1[%c0, %c0_0] : memref<1x128xf32, #tpu.memory_space<vmem>>, vector<1x128xf32>
    %c0_1 = arith.constant 0 : index
    %c0_2 = arith.constant 0 : index
    %1 = vector.load %arg2[%c0_1, %c0_2] : memref<32x1xf32, #tpu.memory_space<vmem>>, vector<32x1xf32>
    %c0_3 = arith.constant 0 : index
    %c0_4 = arith.constant 0 : index
    %2 = vector.load %arg3[%c0_3, %c0_4] : memref<32x1xf32, #tpu.memory_space<vmem>>, vector<32x1xf32>
    %3 = vector.broadcast %1 : vector<32x1xf32> to vector<32x128xf32>
    %4 = vector.broadcast %0 : vector<1x128xf32> to vector<32x128xf32>
    %5 = arith.mulf %3, %4 : vector<32x128xf32>
    %6 = vector.broadcast %2 : vector<32x1xf32> to vector<32x128xf32>
    %7 = arith.addf %5, %6 : vector<32x128xf32>
    %cst = arith.constant 0.000000e+00 : f32
    %8 = vector.broadcast %cst : f32 to vector<32x128xf32>
    %9 = arith.maximumf %7, %8 : vector<32x128xf32>
    %10 = arith.truncf %9 : vector<32x128xf32> to vector<32x128xbf16>
    %c0_5 = arith.constant 0 : index
    %c0_6 = arith.constant 0 : index
    %11 = vector.load %arg4[%c0_5, %c0_6] : memref<32x32xbf16, #tpu.memory_space<vmem>>, vector<32x32xbf16>
    %c0_7 = arith.constant 0 : index
    %c0_8 = arith.constant 0 : index
    %12 = vector.load %arg5[%c0_7, %c0_8] : memref<32x1xf32, #tpu.memory_space<vmem>>, vector<32x1xf32>
    %cst_9 = arith.constant dense<0.000000e+00> : vector<32x128xf32>
    %13 = tpu.matmul %11, %10, %cst_9 {dimension_numbers = #tpu.dot_dimension_numbers<[1], [0], [0], [1], [0, 0, 1, 1], [], []>} : vector<32x32xbf16>, vector<32x128xbf16>, vector<32x128xf32> -> vector<32x128xf32>
    %14 = vector.broadcast %12 : vector<32x1xf32> to vector<32x128xf32>
    %15 = arith.addf %13, %14 : vector<32x128xf32>
    %cst_10 = arith.constant 0.000000e+00 : f32
    %16 = vector.broadcast %cst_10 : f32 to vector<32x128xf32>
    %17 = arith.maximumf %15, %16 : vector<32x128xf32>
    %18 = arith.truncf %17 : vector<32x128xf32> to vector<32x128xbf16>
    %c0_11 = arith.constant 0 : index
    %c0_12 = arith.constant 0 : index
    %19 = vector.load %arg6[%c0_11, %c0_12] : memref<8x32xbf16, #tpu.memory_space<vmem>>, vector<8x32xbf16>
    %c0_13 = arith.constant 0 : index
    %c0_14 = arith.constant 0 : index
    %20 = vector.load %arg7[%c0_13, %c0_14] : memref<8x1xf32, #tpu.memory_space<vmem>>, vector<8x1xf32>
    %cst_15 = arith.constant dense<0.000000e+00> : vector<8x128xf32>
    %21 = tpu.matmul %19, %18, %cst_15 {dimension_numbers = #tpu.dot_dimension_numbers<[1], [0], [0], [1], [0, 0, 1, 1], [], []>} : vector<8x32xbf16>, vector<32x128xbf16>, vector<8x128xf32> -> vector<8x128xf32>
    %22 = vector.broadcast %20 : vector<8x1xf32> to vector<8x128xf32>
    %23 = arith.addf %21, %22 : vector<8x128xf32>
    %c0_16 = arith.constant 0 : index
    %c0_17 = arith.constant 0 : index
    %24 = vector.load %arg8[%c0_16, %c0_17] : memref<8x128xf32, #tpu.memory_space<vmem>>, vector<8x128xf32>
    tpu.vector_store %arg8[%c0_16, %c0_17], %23 {strides = array<i32>} : memref<8x128xf32, #tpu.memory_space<vmem>>, vector<8x128xf32>,
    return
  }
  func.func @transform_0(%arg0: i32) -> (i32, i32) {
    %c0_i32 = arith.constant 0 : i32
    %c0_i32_0 = arith.constant 0 : i32
    return %c0_i32, %arg0 : i32, i32
  }
  func.func @transform_1(%arg0: i32) -> (i32, i32) {
    %c0_i32 = arith.constant 0 : i32
    %c0_i32_0 = arith.constant 0 : i32
    %c0_i32_1 = arith.constant 0 : i32
    return %c0_i32, %c0_i32_0 : i32, i32
  }
  func.func @transform_2(%arg0: i32) -> (i32, i32) {
    %c0_i32 = arith.constant 0 : i32
    %c0_i32_0 = arith.constant 0 : i32
    %c0_i32_1 = arith.constant 0 : i32
    return %c0_i32, %c0_i32_0 : i32, i32
  }
  func.func @transform_3(%arg0: i32) -> (i32, i32) {
    %c0_i32 = arith.constant 0 : i32
    %c0_i32_0 = arith.constant 0 : i32
    %c0_i32_1 = arith.constant 0 : i32
    return %c0_i32, %c0_i32_0 : i32, i32
  }
  func.func @transform_4(%arg0: i32) -> (i32, i32) {
    %c0_i32 = arith.constant 0 : i32
    %c0_i32_0 = arith.constant 0 : i32
    %c0_i32_1 = arith.constant 0 : i32
    return %c0_i32, %c0_i32_0 : i32, i32
  }
  func.func @transform_5(%arg0: i32) -> (i32, i32) {
    %c0_i32 = arith.constant 0 : i32
    %c0_i32_0 = arith.constant 0 : i32
    %c0_i32_1 = arith.constant 0 : i32
    return %c0_i32, %c0_i32_0 : i32, i32
  }
  func.func @transform_6(%arg0: i32) -> (i32, i32) {
    %c0_i32 = arith.constant 0 : i32
    %c0_i32_0 = arith.constant 0 : i32
    %c0_i32_1 = arith.constant 0 : i32
    return %c0_i32, %c0_i32_0 : i32, i32
  }
  func.func @transform_7(%arg0: i32) -> (i32, i32) {
    %c0_i32 = arith.constant 0 : i32
    %c0_i32_0 = arith.constant 0 : i32
    return %c0_i32, %arg0 : i32, i32
  }
}

</mosaic_0001>

<bundles_post_ra>
// kernel: tpu_custom_call.1
= control target key start
LH: loop header
LB: loop body
LE: loop exit
PB: predicated region body
PF: predicated region fallthrough
CT: control target
= control target key end

     0   :  { %v323_v2 = vmov 0   ;;  %s433_s0 = inlined_call_operand.vmem [shape: f32[1,128], index: 0, kind: input, shape index: {}]   ;;  %s434_s1 = inlined_call_operand.vmem [shape: f32[32,1], index: 1, kind: input, shape index: {}]   ;;  %s435_s2 = inlined_call_operand.vmem [shape: f32[32,1], index: 2, kind: input, shape index: {}]   ;;  %s436_s3 = inlined_call_operand.vmem [shape: bf16[32,32], index: 3, kind: input, shape index: {}]   ;;  %s437_s4 = inlined_call_operand.vmem [shape: f32[32,1], index: 4, kind: input, shape index: {}]   ;;  %s438_s5 = inlined_call_operand.vmem [shape: bf16[8,32], index: 5, kind: input, shape index: {}]   ;;  %s439_s6 = inlined_call_operand.vmem [shape: f32[8,1], index: 6, kind: input, shape index: {}]   ;;  %s440_s7 = inlined_call_operand.hbm [shape: f32[8,128], index: 7, kind: output, shape index: {}]  }
   0x1   :  { %v33_v0 = vld [vmem:[%s435_s2] sm:$0xff]  ;;  %296 = vset.pattern.permute.xlu1 %v323_v2  ;;  %295 = vset.pattern.permute.xlu0 %v323_v2  ;;  %v34_v3 = vld [vmem:[%s435_s2 + $0x8] sm:$0xff] }
   0x2   :  { %v29_v1 = vld [vmem:[%s434_s1] sm:$0xff]  ;;  %69 = vperm.xlu1 %296, %v33_v0   ;;  %v30_v4 = vld [vmem:[%s434_s1 + $0x8] sm:$0xff] }
   0x3   :  { %39 = vperm.xlu0 %295, %v29_v1  }
   0x6   :  { %74 = vperm.xlu1 %296, %v34_v3  }
   0x7   :  { %44 = vperm.xlu0 %295, %v30_v4  }
   0x8   :  { %12 = vsyncpa [#allocation3], 0  ;;  %v32_v5 = vld [vmem:[%s434_s1 + $0x18] sm:$0xff]  ;;  %v31_v6 = vld [vmem:[%s434_s1 + $0x10] sm:$0xff]  ;;  %vm135_vm0 = vcmask 261120   ;;  %v324_v39 = vmov 0.0  }
   0x9   :  { %v36_v7 = vld [vmem:[%s435_s2 + $0x18] sm:$0xff]  ;;  %v35_v8 = vld [vmem:[%s435_s2 + $0x10] sm:$0xff]  ;;  %v102_v9 = vld [vmem:[%s437_s4 + $0x8] sm:$0xff]  ;;  %283 = vmatprep.subr.bf16.mxu1 %v324_v39  ;;  %vm325_vm1 = vmmov 0   ;;  %s326_s29 = smov [#allocation2]  }
   0xa   :  { %54 = vperm.xlu1 %296, %v32_v5   ;;  %v101_v10 = vld [vmem:[%s437_s4] sm:$0xff]  ;;  %v104_v11 = vld [vmem:[%s437_s4 + $0x18] sm:$0xff]  ;;  %v103_v12 = vld [vmem:[%s437_s4 + $0x10] sm:$0xff]  ;;  %287 = vmatprep.mubr.msk.bf16.mxu1 %vm325_vm1, %v324_v39  ;;  %s254_s30 = sshll.u32 %s326_s29, 4  ;;  %s255_s30 = int_to_ptr.vmem [resolvable:$true] %s254_s30 }
   0xb   :  { %49 = vperm.xlu0 %295, %v31_v6   ;;  %v297_v13 = vld [vmem:[%s436_s3] sm:$0xff]   ;;  %v298_v38 = vld [vmem:[%s436_s3 + $0x8] sm:$0xff]   ;;  %s299_s8 = scalar_lea.vmem %s255_s30, 128  ;;  %p304_p1 = scmp.lt.s32.totalorder %s255_s30, %s255_s30 }
   0xc   :  { %v198_v14 = vld [vmem:[%s439_s6] sm:$0xff]  ;;  %279 = vmatprep.mubr.msk.bf16.mxu0 %vm135_vm0, %v297_v13  ;;  %p300_p0 = scmp.ne.s32.totalorder %s255_s30, %s299_s8  ;;  %p305_p2 = scmp.lt.s32.totalorder %s299_s8, %s299_s8 }
   0xd   :  { %v262_v15 = vld [vmem:[%s433_s0] ss:$0 sm:$0xff] }
   0xe   :  { %84 = vperm.xlu1 %296, %v36_v7   ;;  %v197_v58 = vld [vmem:[%s438_s5] sm:$0xf]  ;;  %p306_p3 = por %p305_p2, %p304_p1 }
   0xf   :  { %79 = vperm.xlu0 %295, %v35_v8  }
  0x10   :  { %p307_p4 = pnand %p306_p3, %p300_p0 }
  0x12   :  { %112 = vperm.xlu1 %296, %v102_v9  }
  0x13   :  { %107 = vperm.xlu0 %295, %v101_v10  }
  0x16   :  { %122 = vperm.xlu1 %296, %v104_v11  }
  0x17   :  { %117 = vperm.xlu0 %295, %v103_v12  }
  0x1b   :  { %201 = vperm.xlu0 %295, %v198_v14  }
  0x81   :  { %v70_v16 = vpop.permute.xlu1 %69 }
  0x82   :  { %v40_v17 = vpop.permute.xlu0 %39 }
  0x83   :  { %v63_v18 = vmul.f32 %v262_v15, %v40_v17 }
  0x85   :  { %v75_v19 = vpop.permute.xlu1 %74  ;;  %v87_v21 = vadd.f32 %v70_v16, %v63_v18 }
  0x86   :  { %v45_v20 = vpop.permute.xlu0 %44 }
  0x87   :  { %v64_v22 = vmul.f32 %v262_v15, %v45_v20  ;;  %v91_v26 = vmax.f32 %v87_v21, 0.0 }
  0x89   :  { %v88_v23 = vadd.f32 %v75_v19, %v64_v22  ;;  %v55_v24 = vpop.permute.xlu1 %54 }
  0x8a   :  { %v50_v25 = vpop.permute.xlu0 %49  ;;  %v66_v28 = vmul.f32 %v262_v15, %v55_v24 }
  0x8b   :  { %v92_v27 = vmax.f32 %v88_v23, 0.0  ;;  %v65_v29 = vmul.f32 %v262_v15, %v50_v25 }
  0x8d   :  { %v95_v30 = vpack.c.bf16 %v92_v27, %v91_v26  ;;  %v85_v31 = vpop.permute.xlu1 %84 }
  0x8e   :  { %v80_v32 = vpop.permute.xlu0 %79  ;;  %v90_v33 = vadd.f32 %v85_v31, %v66_v28 }
  0x8f   :  { %v89_v34 = vadd.f32 %v80_v32, %v65_v29  ;;  %275 = vmatprep.subr.bf16.mxu0 %v95_v30 }
  0x90   :  { %276 = vmatpush3.bf16.msra.mxu0 %v95_v30  ;;  %v94_v35 = vmax.f32 %v90_v33, 0.0 }
  0x91   :  { %v93_v36 = vmax.f32 %v89_v34, 0.0  ;;  %v113_v41 = vpop.permute.xlu1 %112 }
  0x92   :  { %v108_v40 = vpop.permute.xlu0 %107 }
  0x93   :  { %v96_v37 = vpack.c.bf16 %v94_v35, %v93_v36 }
  0x95   :  { %277 = vmatprep.subr.bf16.mxu0 %v96_v37  ;;  %v123_v46 = vpop.permute.xlu1 %122 }
  0x96   :  { %278 = vmatpush3.bf16.msra.mxu0 %v96_v37  ;;  %v118_v42 = vpop.permute.xlu0 %117 }
  0x99   :  { %280 = vmatmul.mubr.msk.bf16.vlgmr.msra.gmra.mrb[0].mxu0 %vm135_vm0, %v298_v38 }
  0x9a   :  { %v202_v59 = vpop.permute.xlu0 %201 }
 0x16c   :  { %v281_v43 = vpop.f32.mrb[0].mxu0 }
 0x16d   :  { %v185_v44 = vadd.f32 %v281_v43, %v118_v42  ;;  %v176_v45 = vpop.f32.mrb[1].mxu0 }
 0x16e   :  { %v177_v47 = vadd.f32 %v176_v45, %v108_v40  ;;  %v282_v48 = vpop.f32.mrb[2].mxu0 }
 0x16f   :  { %v188_v49 = vadd.f32 %v282_v48, %v123_v46  ;;  %v179_v50 = vpop.f32.mrb[3].mxu0  ;;  %v193_v52 = vmax.f32 %v185_v44, 0.0 }
 0x170   :  { %v180_v51 = vadd.f32 %v179_v50, %v113_v41  ;;  %v191_v54 = vmax.f32 %v177_v47, 0.0 }
 0x171   :  { %v194_v53 = vmax.f32 %v188_v49, 0.0 }
 0x172   :  { %v192_v55 = vmax.f32 %v180_v51, 0.0 }
 0x173   :  { %v196_v56 = vpack.c.bf16 %v194_v53, %v193_v52 }
 0x174   :  { %v195_v57 = vpack.c.bf16 %v192_v55, %v191_v54 }
 0x176   :  { %284 = vmatpush3.bf16.msra.mxu1 %v195_v57 }
 0x177   :  { %285 = vmatprep.subr.bf16.mxu1 %v324_v39 }
 0x17a   :  { %286 = vmatpush3.bf16.msra.mxu1 %v196_v56 }
 0x17d   :  { %288 = vmatmul.mubr.msk.bf16.vlgmr.msra.gmra.mrb[0].mxu1 %vm135_vm0, %v197_v58 }
 0x250   :  { %v241_v60 = vpop.f32.mrb[0].mxu1 }
 0x251   :  { %v242_v61 = vadd.f32 %v241_v60, %v202_v59  ;;  %v289_v62 = vpop.f32.mrb[1].mxu1 }
 0x252   :  { %v244_v63 = vpop.f32.mrb[2].mxu1 }
 0x253   :  { %247 = vst [vmem:[#allocation2] sm:$0xff] %v242_v61  ;;  %v290_v0 = vpop.f32.mrb[3].mxu1 }
 0x254   :  { %310 = shalt.err (!%p307_p4)
}
 0x255   :  { %s311_s10 = scalar_lea.hbm %s440_s7, 128 }
 0x256   :  { %p312_p5 = scmp.ne.s32.totalorder %s440_s7, %s311_s10  ;;  %p315_p6 = scmp.lt.u32.totalorder %s311_s10, %s440_s7 }
 0x258   :  { %p317_p7 = pnand %p315_p6, %p312_p5 }
 0x25a   :  { %320 = shalt.err (!%p317_p7)
}
 0x25b   :  { %257 = dma.vmem_to_hbm [thread:$0]  %s255_s30, 128, %s440_s7, [#allocation3]  }
 0x25c   :  { %321 = dma.done.wait [#allocation3], 128  }
 0x25d   :  { %322 = vsyncadd [#allocation3], 4294967168 }
 0x25e   :  { %261 = vsyncpa [#allocation3], 1 }

</bundles_post_ra>
